<compile_context>
chip_gen: v7x
topology: tpu7x:2x2x1
jax: 0.10.0
libtpu: 0.0.40
codegen_flags: <defaults>
</compile_context>

<pallas_src>
import jax
import jax.numpy as jnp
import numpy as np
from jax.experimental import pallas as pl
from jax.experimental.pallas import tpu as pltpu


def _round_up(a: int, b: int) -> int:
    return ((a + b - 1) // b) * b


def _pick_tile(dim: int, max_tile: int):
    """Pick a 128-aligned tile for `dim`.  Prefer a tile that divides `dim`
    exactly (no padding pass); otherwise pad `dim` up to a tile multiple."""
    if dim % 128 == 0:
        best = 128
        t = 128
        lim = min(max_tile, dim)
        while t <= lim:
            if dim % t == 0:
                best = t
            t += 128
        return best, dim
    t = min(max_tile, _round_up(dim, 128))
    return t, _round_up(dim, t)


# ----------------------------------------------------------------------------
# Kernel A: pure GEMM + bias (adapted weight precomputed outside, bf16).
# ----------------------------------------------------------------------------
def _gemm_bias_kernel(x_ref, w_ref, bias_ref, o_ref, acc_ref):
    k = pl.program_id(2)

    @pl.when(k == 0)
    def _():
        acc_ref[...] = jnp.broadcast_to(
            bias_ref[...].astype(jnp.float32), acc_ref.shape)

    acc_ref[...] += jnp.dot(x_ref[...], w_ref[...],
                            preferred_element_type=jnp.float32)

    @pl.when(k == pl.num_programs(2) - 1)
    def _():
        o_ref[...] = acc_ref[...].astype(o_ref.dtype)


# ----------------------------------------------------------------------------
# Kernel B: fused LoRA GEMM (adapted tile = W_tile + A_tile @ B_tile) + bias.
# Used in the small-M regime so the weight is streamed from HBM exactly once.
# ----------------------------------------------------------------------------
def _fused_lora_gemm_kernel(x_ref, w_ref, a_ref, b_ref, bias_ref, o_ref, acc_ref):
    k = pl.program_id(2)

    @pl.when(k == 0)
    def _():
        acc_ref[...] = jnp.broadcast_to(
            bias_ref[...].astype(jnp.float32), acc_ref.shape)

    delta = jnp.dot(a_ref[...], b_ref[...], preferred_element_type=jnp.float32)
    adapted = (w_ref[...].astype(jnp.float32) + delta).astype(jnp.bfloat16)
    acc_ref[...] += jnp.dot(x_ref[...], adapted,
                            preferred_element_type=jnp.float32)

    @pl.when(k == pl.num_programs(2) - 1)
    def _():
        o_ref[...] = acc_ref[...].astype(o_ref.dtype)


def lora_conv1d(x, weight, bias, A, B, *, tm=256, tn_max=768, tk_max=1024,
                fuse_lora=None):
    """x: (..., nx), weight: (nx, nf), bias: (nf,), A: (nx, rank), B: (rank, nf)."""
    nx, nf = weight.shape
    rank = A.shape[-1]
    orig_lead = x.shape[:-1]
    out_dtype = x.dtype

    x2d = x.reshape(-1, nx)
    M = x2d.shape[0]

    # ---- tile selection (prefer tiles that divide nf/nx -> no weight padding) ----
    tm_e = min(tm, _round_up(max(M, 1), 16))     # 16-row multiples (bf16 tile)
    tn_e, nf_p = _pick_tile(nf, tn_max)
    tk_e, nx_p = _pick_tile(nx, tk_max)
    M_p = _round_up(M, tm_e)

    num_i = M_p // tm_e
    num_j = nf_p // tn_e
    num_k = nx_p // tk_e

    if fuse_lora is None:
        # Small-M (decode-style) regime: weight streaming dominates -> fuse.
        fuse_lora = num_i <= 2

    # ---- activations in bf16 for the MXU; accumulation stays f32 ----
    x2d = x2d.astype(jnp.bfloat16)
    if (M_p, nx_p) != (M, nx):
        x2d = jnp.pad(x2d, ((0, M_p - M), (0, nx_p - nx)))

    bias_f = bias.astype(jnp.float32)
    if nf_p != nf:
        bias_f = jnp.pad(bias_f, (0, nf_p - nf))
    bias2d = bias_f.reshape(1, nf_p)

    x_spec = pl.BlockSpec((tm_e, tk_e), lambda i, j, k: (i, k))
    w_spec = pl.BlockSpec((tk_e, tn_e), lambda i, j, k: (k, j))
    bias_spec = pl.BlockSpec((1, tn_e), lambda i, j, k: (0, j))
    out_spec = pl.BlockSpec((tm_e, tn_e), lambda i, j, k: (i, j))
    acc_scratch = pltpu.VMEM((tm_e, tn_e), jnp.float32)

    out_shape = jax.ShapeDtypeStruct((M_p, nf_p), out_dtype)
    compiler_params = pltpu.CompilerParams(
        dimension_semantics=("parallel", "parallel", "arbitrary"))

    out_bytes = M_p * nf_p * jnp.dtype(out_dtype).itemsize
    gemm_flops = 2 * M_p * nx_p * nf_p
    x_stream_bytes = num_j * M_p * nx_p * 2            # x re-read once per j tile

    if fuse_lora:
        # Weight stays in its original dtype (read from HBM exactly once per i
        # tile, no extra cast/pad pass); A/B are tiny and kept f32.
        w_p = weight
        if (nx_p, nf_p) != (nx, nf):
            w_p = jnp.pad(w_p, ((0, nx_p - nx), (0, nf_p - nf)))
        A_p = A.astype(jnp.float32)
        if nx_p != nx:
            A_p = jnp.pad(A_p, ((0, nx_p - nx), (0, 0)))
        B_p = B.astype(jnp.float32)
        if nf_p != nf:
            B_p = jnp.pad(B_p, ((0, 0), (0, nf_p - nf)))

        w_bytes = nx_p * nf_p * jnp.dtype(w_p.dtype).itemsize
        cost = pl.CostEstimate(
            flops=gemm_flops + 2 * num_i * nx_p * rank * nf_p,
            transcendentals=0,
            bytes_accessed=x_stream_bytes + num_i * w_bytes + out_bytes)

        out2d = pl.pallas_call(
            _fused_lora_gemm_kernel,
            out_shape=out_shape,
            grid_spec=pltpu.PrefetchScalarGridSpec(
                num_scalar_prefetch=0,
                grid=(num_i, num_j, num_k),
                in_specs=[
                    x_spec,                                            # x (bf16)
                    w_spec,                                            # W
                    pl.BlockSpec((tk_e, rank), lambda i, j, k: (k, 0)),  # A
                    pl.BlockSpec((rank, tn_e), lambda i, j, k: (0, j)),  # B
                    bias_spec,                                         # bias row
                ],
                out_specs=out_spec,
                scratch_shapes=[acc_scratch]),
            compiler_params=compiler_params,
            cost_estimate=cost,
        )(x2d, w_p, A_p, B_p, bias2d)
    else:
        # Large-M regime: build adapted = W + A @ B once in plain XLA (fuses the
        # rank-r outer product and the bf16 cast), then a pure bf16 GEMM.
        delta = jnp.dot(A.astype(jnp.float32), B.astype(jnp.float32),
                        preferred_element_type=jnp.float32)
        adapted = (weight.astype(jnp.float32) + delta).astype(jnp.bfloat16)
        if (nx_p, nf_p) != (nx, nf):
            adapted = jnp.pad(adapted, ((0, nx_p - nx), (0, nf_p - nf)))

        cost = pl.CostEstimate(
            flops=gemm_flops,
            transcendentals=0,
            bytes_accessed=x_stream_bytes + num_i * nx_p * nf_p * 2 + out_bytes)

        out2d = pl.pallas_call(
            _gemm_bias_kernel,
            out_shape=out_shape,
            grid_spec=pltpu.PrefetchScalarGridSpec(
                num_scalar_prefetch=0,
                grid=(num_i, num_j, num_k),
                in_specs=[x_spec, w_spec, bias_spec],
                out_specs=out_spec,
                scratch_shapes=[acc_scratch]),
            compiler_params=compiler_params,
            cost_estimate=cost,
        )(x2d, adapted, bias2d)

    out = out2d
    if (M_p, nf_p) != (M, nf):
        out = out[:M, :nf]
    return out.reshape(*orig_lead, nf)


if __name__ == "__main__":
    # Small synthetic shapes consistent with the module:
    #   c_attn.weight: (nx, nf), c_attn.bias: (nf,), A: (nx, rank), B: (rank, nf)
    batch, seq = 2, 8
    nx, nf, rank = 256, 512, 10

    key = jax.random.PRNGKey(0)
    kx, kw, kb, ka, kbb = jax.random.split(key, 5)

    x = jax.random.normal(kx, (batch, seq, nx), dtype=jnp.float32)
    weight = jax.random.normal(kw, (nx, nf), dtype=jnp.float32) * 0.02
    bias = jax.random.normal(kb, (nf,), dtype=jnp.float32) * 0.02
    A = jax.random.normal(ka, (nx, rank), dtype=jnp.float32)
    B = jax.random.normal(kbb, (rank, nf), dtype=jnp.float32)

    # Exercise both regimes on the same small inputs.
    out_fused = jax.block_until_ready(
        lora_conv1d(x, weight, bias, A, B, fuse_lora=True))
    out_gemm = jax.block_until_ready(
        lora_conv1d(x, weight, bias, A, B, fuse_lora=False))

    assert out_fused.shape == (batch, seq, nf), out_fused.shape
    assert out_gemm.shape == (batch, seq, nf), out_gemm.shape
    assert out_fused.dtype == x.dtype

    # Exact (float64) reference of the PyTorch module semantics.
    xs = np.asarray(x, dtype=np.float64).reshape(-1, nx)
    adapted_ref = np.asarray(weight, np.float64) + \
        np.asarray(A, np.float64) @ np.asarray(B, np.float64)
    ref = (xs @ adapted_ref + np.asarray(bias, np.float64)).reshape(batch, seq, nf)

    # bf16 MXU feed -> relaxed tolerance vs. the exact f32 module semantics.
    np.testing.assert_allclose(np.asarray(out_fused, np.float64), ref,
                               rtol=2e-2, atol=1.0)
    np.testing.assert_allclose(np.asarray(out_gemm, np.float64), ref,
                               rtol=2e-2, atol=1.0)

    print("KERNEL_OK")
</pallas_src>

<mosaic_0001>
module attributes {stable_mosaic.version = 11 : i64} {
  func.func @_fused_lora_gemm_kernel(%arg0: i32, %arg1: i32, %arg2: i32, %arg3: memref<16x256xbf16, #tpu.memory_space<vmem>>, %arg4: memref<256x512xf32, #tpu.memory_space<vmem>>, %arg5: memref<256x10xf32, #tpu.memory_space<vmem>>, %arg6: memref<10x512xf32, #tpu.memory_space<vmem>>, %arg7: memref<1x512xf32, #tpu.memory_space<vmem>>, %arg8: memref<16x512xf32, #tpu.memory_space<vmem>>, %arg9: memref<16x512xf32, #tpu.memory_space<vmem>>) attributes {dimension_semantics = [#tpu.dimension_semantics<parallel>, #tpu.dimension_semantics<parallel>, #tpu.dimension_semantics<arbitrary>], iteration_bounds = array<i64: 1, 1, 1>, scalar_prefetch = 0 : i64, scratch_operands = 1 : i64, tpu.core_type = #tpu.core_type<tc>, window_params = [{transform_indices = @transform_0, window_bounds = array<i64: 16, 256>}, {transform_indices = @transform_1, window_bounds = array<i64: 256, 512>}, {transform_indices = @transform_2, window_bounds = array<i64: 256, 10>}, {transform_indices = @transform_3, window_bounds = array<i64: 10, 512>}, {transform_indices = @transform_4, window_bounds = array<i64: 1, 512>}, {transform_indices = @transform_5, window_bounds = array<i64: 16, 512>}]} {
    %c0_i32 = arith.constant 0 : i32
    %0 = arith.cmpi eq, %arg2, %c0_i32 : i32
    %1 = arith.extui %0 : i1 to i32
    %c0_i32_0 = arith.constant 0 : i32
    %2 = arith.cmpi ne, %1, %c0_i32_0 : i32
    scf.if %2 {
      %c0_15 = arith.constant 0 : index
      %c0_16 = arith.constant 0 : index
      %17 = vector.load %arg7[%c0_15, %c0_16] : memref<1x512xf32, #tpu.memory_space<vmem>>, vector<1x512xf32>
      %18 = vector.shape_cast %17 : vector<1x512xf32> to vector<1x512xf32>
      %19 = vector.broadcast %18 : vector<1x512xf32> to vector<16x512xf32>
      %c0_17 = arith.constant 0 : index
      %c0_18 = arith.constant 0 : index
      %20 = vector.load %arg9[%c0_17, %c0_18] : memref<16x512xf32, #tpu.memory_space<vmem>>, vector<16x512xf32>
      tpu.vector_store %arg9[%c0_17, %c0_18], %19 {strides = array<i32>} : memref<16x512xf32, #tpu.memory_space<vmem>>, vector<16x512xf32>,
    } else {
    }
    %c0 = arith.constant 0 : index
    %c0_1 = arith.constant 0 : index
    %3 = vector.load %arg5[%c0, %c0_1] : memref<256x10xf32, #tpu.memory_space<vmem>>, vector<256x10xf32>
    %c0_2 = arith.constant 0 : index
    %c0_3 = arith.constant 0 : index
    %4 = vector.load %arg6[%c0_2, %c0_3] : memref<10x512xf32, #tpu.memory_space<vmem>>, vector<10x512xf32>
    %cst = arith.constant dense<0.000000e+00> : vector<256x512xf32>
    %5 = tpu.matmul %3, %4, %cst {dimension_numbers = #tpu.dot_dimension_numbers<[1], [0], [0], [1], [0, 0, 1, 1], [], []>} : vector<256x10xf32>, vector<10x512xf32>, vector<256x512xf32> -> vector<256x512xf32>
    %c0_4 = arith.constant 0 : index
    %c0_5 = arith.constant 0 : index
    %6 = vector.load %arg4[%c0_4, %c0_5] : memref<256x512xf32, #tpu.memory_space<vmem>>, vector<256x512xf32>
    %7 = arith.addf %6, %5 : vector<256x512xf32>
    %8 = arith.truncf %7 : vector<256x512xf32> to vector<256x512xbf16>
    %c0_6 = arith.constant 0 : index
    %c0_7 = arith.constant 0 : index
    %9 = vector.load %arg9[%c0_6, %c0_7] : memref<16x512xf32, #tpu.memory_space<vmem>>, vector<16x512xf32>
    %c0_8 = arith.constant 0 : index
    %c0_9 = arith.constant 0 : index
    %10 = vector.load %arg3[%c0_8, %c0_9] : memref<16x256xbf16, #tpu.memory_space<vmem>>, vector<16x256xbf16>
    %cst_10 = arith.constant dense<0.000000e+00> : vector<16x512xf32>
    %11 = tpu.matmul %10, %8, %cst_10 {dimension_numbers = #tpu.dot_dimension_numbers<[1], [0], [0], [1], [0, 0, 1, 1], [], []>} : vector<16x256xbf16>, vector<256x512xbf16>, vector<16x512xf32> -> vector<16x512xf32>
    %12 = arith.addf %9, %11 : vector<16x512xf32>
    %c0_11 = arith.constant 0 : index
    %c0_12 = arith.constant 0 : index
    %13 = vector.load %arg9[%c0_11, %c0_12] : memref<16x512xf32, #tpu.memory_space<vmem>>, vector<16x512xf32>
    tpu.vector_store %arg9[%c0_11, %c0_12], %12 {strides = array<i32>} : memref<16x512xf32, #tpu.memory_space<vmem>>, vector<16x512xf32>,
    %c0_i32_13 = arith.constant 0 : i32
    %14 = arith.cmpi eq, %arg2, %c0_i32_13 : i32
    %15 = arith.extui %14 : i1 to i32
    %c0_i32_14 = arith.constant 0 : i32
    %16 = arith.cmpi ne, %15, %c0_i32_14 : i32
    scf.if %16 {
      %c0_15 = arith.constant 0 : index
      %c0_16 = arith.constant 0 : index
      %17 = vector.load %arg9[%c0_15, %c0_16] : memref<16x512xf32, #tpu.memory_space<vmem>>, vector<16x512xf32>
      %c0_17 = arith.constant 0 : index
      %c0_18 = arith.constant 0 : index
      %18 = vector.load %arg8[%c0_17, %c0_18] : memref<16x512xf32, #tpu.memory_space<vmem>>, vector<16x512xf32>
      tpu.vector_store %arg8[%c0_17, %c0_18], %17 {strides = array<i32>} : memref<16x512xf32, #tpu.memory_space<vmem>>, vector<16x512xf32>,
    } else {
    }
    return
  }
  func.func @transform_0(%arg0: i32, %arg1: i32, %arg2: i32) -> (i32, i32) {
    %c0_i32 = arith.constant 0 : i32
    return %arg0, %arg2 : i32, i32
  }
  func.func @transform_1(%arg0: i32, %arg1: i32, %arg2: i32) -> (i32, i32) {
    %c0_i32 = arith.constant 0 : i32
    return %arg2, %arg1 : i32, i32
  }
  func.func @transform_2(%arg0: i32, %arg1: i32, %arg2: i32) -> (i32, i32) {
    %c0_i32 = arith.constant 0 : i32
    %c0_i32_0 = arith.constant 0 : i32
    return %arg2, %c0_i32 : i32, i32
  }
  func.func @transform_3(%arg0: i32, %arg1: i32, %arg2: i32) -> (i32, i32) {
    %c0_i32 = arith.constant 0 : i32
    %c0_i32_0 = arith.constant 0 : i32
    return %c0_i32, %arg1 : i32, i32
  }
  func.func @transform_4(%arg0: i32, %arg1: i32, %arg2: i32) -> (i32, i32) {
    %c0_i32 = arith.constant 0 : i32
    %c0_i32_0 = arith.constant 0 : i32
    return %c0_i32, %arg1 : i32, i32
  }
  func.func @transform_5(%arg0: i32, %arg1: i32, %arg2: i32) -> (i32, i32) {
    %c0_i32 = arith.constant 0 : i32
    return %arg0, %arg1 : i32, i32
  }
}

</mosaic_0001>

<bundles_post_ra>
// kernel: tpu_custom_call.1
= control target key start
LH: loop header
LB: loop body
LE: loop exit
PB: predicated region body
PF: predicated region fallthrough
CT: control target
= control target key end

     0   :  { %10 = vsyncpa [#allocation4], 0  ;;  %s1685_s0 = inlined_call_operand.vmem [shape: bf16[16,256], index: 0, kind: input, shape index: {}]   ;;  %s1686_s1 = inlined_call_operand.hbm [shape: f32[256,512], index: 1, kind: input, shape index: {}]   ;;  %s1687_s2 = inlined_call_operand.vmem [shape: f32[256,10], index: 2, kind: input, shape index: {}]   ;;  %s1688_s3 = inlined_call_operand.vmem [shape: f32[10,512], index: 3, kind: input, shape index: {}]   ;;  %s1689_s4 = inlined_call_operand.vmem [shape: f32[1,512], index: 4, kind: input, shape index: {}]   ;;  %s1690_s5 = inlined_call_operand.hbm [shape: f32[16,512], index: 5, kind: output, shape index: {}]  }
   0x1   :  { %11 = vsyncpa [#allocation5], 0  ;;  %s1350_s18 = smov [#allocation3]   ;;  %s1302_s22 = scalar_lea.hbm %s1686_s1, 16384 }
   0x2   :  { %s19_s19 = sshll.u32 %s1350_s18, 4  ;;  %p1303_p0 = scmp.ne.s32.totalorder %s1686_s1, %s1302_s22  ;;  %s20_s19 = int_to_ptr.vmem [resolvable:$true] %s19_s19 }
   0x3   :  { %p1306_p1 = scmp.lt.u32.totalorder %s1302_s22, %s1686_s1 }
   0x5   :  { %p1308_p2 = pnand %p1306_p1, %p1303_p0 }
   0x7   :  { %1311 = shalt.err (!%p1308_p2)
}
   0x8   :  { %s1312_s27 = scalar_lea.vmem %s20_s19, 16384  ;;  %p1317_p4 = scmp.lt.s32.totalorder %s20_s19, %s20_s19 }
   0x9   :  { %p1313_p3 = scmp.ne.s32.totalorder %s20_s19, %s1312_s27  ;;  %p1318_p5 = scmp.lt.s32.totalorder %s1312_s27, %s1312_s27 }
   0xb   :  { %p1319_p6 = por %p1318_p5, %p1317_p4 }
   0xd   :  { %p1320_p7 = pnand %p1319_p6, %p1313_p3 }
   0xf   :  { %1323 = shalt.err (!%p1320_p7)
}
  0x10   :  { %s1351_s28 = smov 512   ;;  %s1352_s29 = smov 32  }
  0x11   :  { %25 = dma.hbm_to_vmem [thread:$0]  %s1686_s1, 16384, %s20_s19, [#allocation4], %s1351_s28, %s1351_s28, %s1352_s29  }
  0x12   :  { %1346 = dma.done.wait [#allocation4], 16384  }
  0x13   :  { %1347 = vsyncadd [#allocation4], 4294950912  ;;  %v1353_v0 = vmov 0.0   ;;  %vm206_vm0 = vcmask 1041408   ;;  %vm1354_vm1 = vmmov 1   ;;  %v102_v2 = vld [vmem:[%s1688_s3 + $0x8] sm:$0xff] }
  0x14   :  { %283 = vmatprep.mubr.f32.mxu0 %v1353_v0  ;;  %540 = vmatprep.mubr.f32.mxu1 %v1353_v0  ;;  %vm1403_vm2 = vmpackc.low %vm206_vm0, %vm1354_vm1  ;;  %v106_v3 = vld [vmem:[%s1688_s3 + $0x28] sm:$0x3]  ;;  %v104_v4 = vld [vmem:[%s1688_s3 + $0x18] sm:$0xff]  ;;  %vm109_vm3 = vcmask 80896  }
  0x15   :  { %v1281_v5 = vpack.c.bf16 %v106_v3, %v102_v2  ;;  %v108_v6 = vld [vmem:[%s1688_s3 + $0x38] sm:$0x3]  ;;  %v101_v7 = vld [vmem:[%s1688_s3] sm:$0xff]  ;;  %v103_v11 = vld [vmem:[%s1688_s3 + $0x10] sm:$0xff] }
  0x16   :  { %v105_v8 = vld [vmem:[%s1688_s3 + $0x20] sm:$0x3]  ;;  %v1287_v9 = vpack.c.bf16 %v108_v6, %v104_v4  ;;  %v107_v12 = vld [vmem:[%s1688_s3 + $0x30] sm:$0x3]  ;;  %v70_v15 = vld [vmem:[%s1687_s2 + $0x8] sm:$0xff] }
  0x17   :  { %v1284_v10 = vpack.c.bf16 %v105_v8, %v101_v7  ;;  %1283 = vmatprep.subr.msk.bf16.mxu0 %vm1403_vm2, %v1281_v5  ;;  %v1290_v13 = vpack.c.bf16 %v107_v12, %v103_v11  ;;  %v69_v14 = vld [vmem:[%s1687_s2] sm:$0xff]  ;;  %v71_v16 = vld [vmem:[%s1687_s2 + $0x10] sm:$0xff]  ;;  %v72_v17 = vld [vmem:[%s1687_s2 + $0x18] sm:$0xff] }
  0x18   :  { %1289 = vmatprep.subr.msk.bf16.mxu1 %vm1403_vm2, %v1287_v9  ;;  %v73_v18 = vld [vmem:[%s1687_s2 + $0x20] sm:$0xff]  ;;  %v74_v19 = vld [vmem:[%s1687_s2 + $0x28] sm:$0xff]  ;;  %v75_v20 = vld [vmem:[%s1687_s2 + $0x30] sm:$0xff] }
  0x19   :  { %1286 = vmatpush1.bf16.msk.msra.mxu0 %vm1403_vm2, %v1284_v10  ;;  %1292 = vmatpush1.bf16.msk.msra.mxu1 %vm1403_vm2, %v1290_v13  ;;  %v76_v21 = vld [vmem:[%s1687_s2 + $0x38] sm:$0xff]  ;;  %v77_v22 = vld [vmem:[%s1687_s2 + $0x40] sm:$0xff]  ;;  %v78_v23 = vld [vmem:[%s1687_s2 + $0x48] sm:$0xff] }
  0x1a   :  { %v79_v24 = vld [vmem:[%s1687_s2 + $0x50] sm:$0xff]  ;;  %v80_v25 = vld [vmem:[%s1687_s2 + $0x58] sm:$0xff]  ;;  %v81_v26 = vld [vmem:[%s1687_s2 + $0x60] sm:$0xff] }
  0x1b   :  { %v82_v27 = vld [vmem:[%s1687_s2 + $0x68] sm:$0xff]  ;;  %v83_v28 = vld [vmem:[%s1687_s2 + $0x70] sm:$0xff]  ;;  %v84_v29 = vld [vmem:[%s1687_s2 + $0x78] sm:$0xff] }
  0x1c   :  { %1213 = vmatmul.mubr.msk.f32.vlgmr.msra.gmra.mrb[0].mxu0 %vm109_vm3, %v69_v14  ;;  %1247 = vmatmul.mubr.msk.f32.vlgmr.msra.gmra.mrb[0].mxu1 %vm109_vm3, %v69_v14  ;;  %v85_v30 = vld [vmem:[%s1687_s2 + $0x80] sm:$0xff]  ;;  %v86_v31 = vld [vmem:[%s1687_s2 + $0x88] sm:$0xff]  ;;  %v87_v32 = vld [vmem:[%s1687_s2 + $0x90] sm:$0xff] }
  0x1d   :  { %289 = vmatprep.mubr.f32.mxu0 %v1353_v0  ;;  %546 = vmatprep.mubr.f32.mxu1 %v1353_v0  ;;  %v88_v33 = vld [vmem:[%s1687_s2 + $0x98] sm:$0xff]  ;;  %v89_v34 = vld [vmem:[%s1687_s2 + $0xa0] sm:$0xff]  ;;  %v90_v35 = vld [vmem:[%s1687_s2 + $0xa8] sm:$0xff] }
  0x1e   :  { %v91_v36 = vld [vmem:[%s1687_s2 + $0xb0] sm:$0xff]  ;;  %v92_v37 = vld [vmem:[%s1687_s2 + $0xb8] sm:$0xff]  ;;  %v93_v38 = vld [vmem:[%s1687_s2 + $0xc0] sm:$0xff] }
  0x1f   :  { %v94_v39 = vld [vmem:[%s1687_s2 + $0xc8] sm:$0xff]  ;;  %v95_v40 = vld [vmem:[%s1687_s2 + $0xd0] sm:$0xff]  ;;  %v96_v41 = vld [vmem:[%s1687_s2 + $0xd8] sm:$0xff] }
  0x20   :  { %1214 = vmatmul.mubr.msk.f32.gmra.mrb[2].mxu0 %vm109_vm3, %v70_v15  ;;  %1248 = vmatmul.mubr.msk.f32.gmra.mrb[2].mxu1 %vm109_vm3, %v70_v15  ;;  %v97_v42 = vld [vmem:[%s1687_s2 + $0xe0] sm:$0xff]  ;;  %v98_v43 = vld [vmem:[%s1687_s2 + $0xe8] sm:$0xff]  ;;  %v99_v44 = vld [vmem:[%s1687_s2 + $0xf0] sm:$0xff] }
  0x21   :  { %295 = vmatprep.mubr.f32.mxu0 %v1353_v0  ;;  %552 = vmatprep.mubr.f32.mxu1 %v1353_v0  ;;  %v100_v45 = vld [vmem:[%s1687_s2 + $0xf8] sm:$0xff]  ;;  %v733_v49 = vld [vmem:[#allocation3] sm:$0xff]  ;;  %v735_v50 = vld [vmem:[#allocation3 + $0x10] sm:$0xff] }
  0x22   :  { %v737_v52 = vld [vmem:[#allocation3 + $0x20] sm:$0xff]  ;;  %v734_v53 = vld [vmem:[#allocation3 + $0x8] sm:$0xff]  ;;  %v739_v54 = vld [vmem:[#allocation3 + $0x30] sm:$0xff] }
  0x23   :  { %v738_v55 = vld [vmem:[#allocation3 + $0x28] sm:$0xff]  ;;  %v736_v56 = vld [vmem:[#allocation3 + $0x18] sm:$0xff]  ;;  %v741_v14 = vld [vmem:[#allocation3 + $0x40] sm:$0xff] }
  0x24   :  { %1215 = vmatmul.mubr.msk.f32.gmra.mrb[4].mxu0 %vm109_vm3, %v71_v16  ;;  %1249 = vmatmul.mubr.msk.f32.gmra.mrb[4].mxu1 %vm109_vm3, %v71_v16  ;;  %v740_v58 = vld [vmem:[#allocation3 + $0x38] sm:$0xff]  ;;  %v1301_v59 = vld [vmem:[%s1685_s0 + $0x4] ss:$8 sps:$4 sm:$0xff]   ;;  %v743_v15 = vld [vmem:[#allocation3 + $0x50] sm:$0xff] }
  0x25   :  { %301 = vmatprep.mubr.f32.mxu0 %v1353_v0  ;;  %558 = vmatprep.mubr.f32.mxu1 %v1353_v0 }
  0x28   :  { %1216 = vmatmul.mubr.msk.f32.gmra.mrb[6].mxu0 %vm109_vm3, %v72_v17  ;;  %1250 = vmatmul.mubr.msk.f32.gmra.mrb[6].mxu1 %vm109_vm3, %v72_v17  ;;  %v745_v17 = vld [vmem:[#allocation3 + $0x60] sm:$0xff] }
  0x29   :  { %307 = vmatprep.mubr.f32.mxu0 %v1353_v0  ;;  %564 = vmatprep.mubr.f32.mxu1 %v1353_v0 }
  0x2c   :  { %1217 = vmatmul.mubr.msk.f32.gmra.mrb[8].mxu0 %vm109_vm3, %v73_v18  ;;  %1251 = vmatmul.mubr.msk.f32.gmra.mrb[8].mxu1 %vm109_vm3, %v73_v18  ;;  %v742_v18 = vld [vmem:[#allocation3 + $0x48] sm:$0xff] }
  0x2d   :  { %313 = vmatprep.mubr.f32.mxu0 %v1353_v0  ;;  %570 = vmatprep.mubr.f32.mxu1 %v1353_v0 }
  0x30   :  { %1218 = vmatmul.mubr.msk.f32.gmra.mrb[10].mxu0 %vm109_vm3, %v74_v19  ;;  %1252 = vmatmul.mubr.msk.f32.gmra.mrb[10].mxu1 %vm109_vm3, %v74_v19  ;;  %v747_v19 = vld [vmem:[#allocation3 + $0x70] sm:$0xff] }
  0x31   :  { %319 = vmatprep.mubr.f32.mxu0 %v1353_v0  ;;  %576 = vmatprep.mubr.f32.mxu1 %v1353_v0 }
  0x34   :  { %1219 = vmatmul.mubr.msk.f32.gmra.mrb[12].mxu0 %vm109_vm3, %v75_v20  ;;  %1253 = vmatmul.mubr.msk.f32.gmra.mrb[12].mxu1 %vm109_vm3, %v75_v20  ;;  %v746_v20 = vld [vmem:[#allocation3 + $0x68] sm:$0xff] }
  0x35   :  { %325 = vmatprep.mubr.f32.mxu0 %v1353_v0  ;;  %582 = vmatprep.mubr.f32.mxu1 %v1353_v0 }
  0x38   :  { %1220 = vmatmul.mubr.msk.f32.gmra.mrb[14].mxu0 %vm109_vm3, %v76_v21  ;;  %1254 = vmatmul.mubr.msk.f32.gmra.mrb[14].mxu1 %vm109_vm3, %v76_v21  ;;  %v744_v21 = vld [vmem:[#allocation3 + $0x58] sm:$0xff] }
  0x39   :  { %331 = vmatprep.mubr.f32.mxu0 %v1353_v0  ;;  %588 = vmatprep.mubr.f32.mxu1 %v1353_v0 }
  0x3c   :  { %1221 = vmatmul.mubr.msk.f32.gmra.mrb[16].mxu0 %vm109_vm3, %v77_v22  ;;  %1255 = vmatmul.mubr.msk.f32.gmra.mrb[16].mxu1 %vm109_vm3, %v77_v22 }
  0x3d   :  { %337 = vmatprep.mubr.f32.mxu0 %v1353_v0  ;;  %594 = vmatprep.mubr.f32.mxu1 %v1353_v0 }
  0x40   :  { %1222 = vmatmul.mubr.msk.f32.gmra.mrb[18].mxu0 %vm109_vm3, %v78_v23  ;;  %1256 = vmatmul.mubr.msk.f32.gmra.mrb[18].mxu1 %vm109_vm3, %v78_v23  ;;  %v748_v23 = vld [vmem:[#allocation3 + $0x78] sm:$0xff] }
  0x41   :  { %343 = vmatprep.mubr.f32.mxu0 %v1353_v0  ;;  %600 = vmatprep.mubr.f32.mxu1 %v1353_v0 }
  0x44   :  { %1223 = vmatmul.mubr.msk.f32.gmra.mrb[20].mxu0 %vm109_vm3, %v79_v24  ;;  %1257 = vmatmul.mubr.msk.f32.gmra.mrb[20].mxu1 %vm109_vm3, %v79_v24 }
  0x45   :  { %349 = vmatprep.mubr.f32.mxu0 %v1353_v0  ;;  %606 = vmatprep.mubr.f32.mxu1 %v1353_v0 }
  0x48   :  { %1224 = vmatmul.mubr.msk.f32.gmra.mrb[22].mxu0 %vm109_vm3, %v80_v25  ;;  %1258 = vmatmul.mubr.msk.f32.gmra.mrb[22].mxu1 %vm109_vm3, %v80_v25 }
  0x49   :  { %355 = vmatprep.mubr.f32.mxu0 %v1353_v0  ;;  %612 = vmatprep.mubr.f32.mxu1 %v1353_v0 }
  0x4c   :  { %1225 = vmatmul.mubr.msk.f32.gmra.mrb[24].mxu0 %vm109_vm3, %v81_v26  ;;  %1259 = vmatmul.mubr.msk.f32.gmra.mrb[24].mxu1 %vm109_vm3, %v81_v26 }
  0x4d   :  { %361 = vmatprep.mubr.f32.mxu0 %v1353_v0  ;;  %618 = vmatprep.mubr.f32.mxu1 %v1353_v0 }
  0x50   :  { %1226 = vmatmul.mubr.msk.f32.gmra.mrb[26].mxu0 %vm109_vm3, %v82_v27  ;;  %1260 = vmatmul.mubr.msk.f32.gmra.mrb[26].mxu1 %vm109_vm3, %v82_v27 }
  0x51   :  { %367 = vmatprep.mubr.f32.mxu0 %v1353_v0  ;;  %624 = vmatprep.mubr.f32.mxu1 %v1353_v0 }
  0x54   :  { %1227 = vmatmul.mubr.msk.f32.gmra.mrb[28].mxu0 %vm109_vm3, %v83_v28  ;;  %1261 = vmatmul.mubr.msk.f32.gmra.mrb[28].mxu1 %vm109_vm3, %v83_v28 }
  0x55   :  { %373 = vmatprep.mubr.f32.mxu0 %v1353_v0  ;;  %630 = vmatprep.mubr.f32.mxu1 %v1353_v0 }
  0x58   :  { %1228 = vmatmul.mubr.msk.f32.gmra.mrb[30].mxu0 %vm109_vm3, %v84_v29  ;;  %1262 = vmatmul.mubr.msk.f32.gmra.mrb[30].mxu1 %vm109_vm3, %v84_v29 }
  0x59   :  { %379 = vmatprep.mubr.f32.mxu0 %v1353_v0  ;;  %636 = vmatprep.mubr.f32.mxu1 %v1353_v0 }
  0x5c   :  { %1229 = vmatmul.mubr.msk.f32.gmra.mrb[32].mxu0 %vm109_vm3, %v85_v30  ;;  %1263 = vmatmul.mubr.msk.f32.gmra.mrb[32].mxu1 %vm109_vm3, %v85_v30 }
  0x5d   :  { %385 = vmatprep.mubr.f32.mxu0 %v1353_v0  ;;  %642 = vmatprep.mubr.f32.mxu1 %v1353_v0 }
  0x60   :  { %1230 = vmatmul.mubr.msk.f32.gmra.mrb[34].mxu0 %vm109_vm3, %v86_v31  ;;  %1264 = vmatmul.mubr.msk.f32.gmra.mrb[34].mxu1 %vm109_vm3, %v86_v31 }
  0x61   :  { %391 = vmatprep.mubr.f32.mxu0 %v1353_v0  ;;  %648 = vmatprep.mubr.f32.mxu1 %v1353_v0 }
  0x64   :  { %1231 = vmatmul.mubr.msk.f32.gmra.mrb[36].mxu0 %vm109_vm3, %v87_v32  ;;  %1265 = vmatmul.mubr.msk.f32.gmra.mrb[36].mxu1 %vm109_vm3, %v87_v32 }
  0x65   :  { %397 = vmatprep.mubr.f32.mxu0 %v1353_v0  ;;  %654 = vmatprep.mubr.f32.mxu1 %v1353_v0 }
  0x68   :  { %1232 = vmatmul.mubr.msk.f32.gmra.mrb[38].mxu0 %vm109_vm3, %v88_v33  ;;  %1266 = vmatmul.mubr.msk.f32.gmra.mrb[38].mxu1 %vm109_vm3, %v88_v33 }
  0x69   :  { %403 = vmatprep.mubr.f32.mxu0 %v1353_v0  ;;  %660 = vmatprep.mubr.f32.mxu1 %v1353_v0 }
  0x6c   :  { %1233 = vmatmul.mubr.msk.f32.gmra.mrb[40].mxu0 %vm109_vm3, %v89_v34  ;;  %1267 = vmatmul.mubr.msk.f32.gmra.mrb[40].mxu1 %vm109_vm3, %v89_v34 }
  0x6d   :  { %409 = vmatprep.mubr.f32.mxu0 %v1353_v0  ;;  %666 = vmatprep.mubr.f32.mxu1 %v1353_v0 }
  0x70   :  { %1234 = vmatmul.mubr.msk.f32.gmra.mrb[42].mxu0 %vm109_vm3, %v90_v35  ;;  %1268 = vmatmul.mubr.msk.f32.gmra.mrb[42].mxu1 %vm109_vm3, %v90_v35 }
  0x71   :  { %415 = vmatprep.mubr.f32.mxu0 %v1353_v0  ;;  %672 = vmatprep.mubr.f32.mxu1 %v1353_v0 }
  0x74   :  { %1235 = vmatmul.mubr.msk.f32.gmra.mrb[44].mxu0 %vm109_vm3, %v91_v36  ;;  %1269 = vmatmul.mubr.msk.f32.gmra.mrb[44].mxu1 %vm109_vm3, %v91_v36 }
  0x75   :  { %421 = vmatprep.mubr.f32.mxu0 %v1353_v0  ;;  %678 = vmatprep.mubr.f32.mxu1 %v1353_v0 }
  0x78   :  { %1236 = vmatmul.mubr.msk.f32.gmra.mrb[46].mxu0 %vm109_vm3, %v92_v37  ;;  %1270 = vmatmul.mubr.msk.f32.gmra.mrb[46].mxu1 %vm109_vm3, %v92_v37 }
  0x79   :  { %427 = vmatprep.mubr.f32.mxu0 %v1353_v0  ;;  %684 = vmatprep.mubr.f32.mxu1 %v1353_v0 }
  0x7c   :  { %1237 = vmatmul.mubr.msk.f32.gmra.mrb[48].mxu0 %vm109_vm3, %v93_v38  ;;  %1271 = vmatmul.mubr.msk.f32.gmra.mrb[48].mxu1 %vm109_vm3, %v93_v38 }
  0x7d   :  { %433 = vmatprep.mubr.f32.mxu0 %v1353_v0  ;;  %690 = vmatprep.mubr.f32.mxu1 %v1353_v0 }
  0x80   :  { %1238 = vmatmul.mubr.msk.f32.gmra.mrb[50].mxu0 %vm109_vm3, %v94_v39  ;;  %1272 = vmatmul.mubr.msk.f32.gmra.mrb[50].mxu1 %vm109_vm3, %v94_v39 }
  0x81   :  { %439 = vmatprep.mubr.f32.mxu0 %v1353_v0  ;;  %696 = vmatprep.mubr.f32.mxu1 %v1353_v0 }
  0x84   :  { %1239 = vmatmul.mubr.msk.f32.gmra.mrb[52].mxu0 %vm109_vm3, %v95_v40  ;;  %1273 = vmatmul.mubr.msk.f32.gmra.mrb[52].mxu1 %vm109_vm3, %v95_v40 }
  0x85   :  { %445 = vmatprep.mubr.f32.mxu0 %v1353_v0  ;;  %702 = vmatprep.mubr.f32.mxu1 %v1353_v0 }
  0x88   :  { %1240 = vmatmul.mubr.msk.f32.gmra.mrb[54].mxu0 %vm109_vm3, %v96_v41  ;;  %1274 = vmatmul.mubr.msk.f32.gmra.mrb[54].mxu1 %vm109_vm3, %v96_v41 }
  0x89   :  { %451 = vmatprep.mubr.f32.mxu0 %v1353_v0  ;;  %708 = vmatprep.mubr.f32.mxu1 %v1353_v0 }
  0x8c   :  { %1241 = vmatmul.mubr.msk.f32.gmra.mrb[56].mxu0 %vm109_vm3, %v97_v42  ;;  %1275 = vmatmul.mubr.msk.f32.gmra.mrb[56].mxu1 %vm109_vm3, %v97_v42  ;;  %v749_v42 = vld [vmem:[#allocation3 + $0x80] sm:$0xff] }
  0x8d   :  { %457 = vmatprep.mubr.f32.mxu0 %v1353_v0  ;;  %714 = vmatprep.mubr.f32.mxu1 %v1353_v0 }
  0x90   :  { %1242 = vmatmul.mubr.msk.f32.gmra.mrb[58].mxu0 %vm109_vm3, %v98_v43  ;;  %1276 = vmatmul.mubr.msk.f32.gmra.mrb[58].mxu1 %vm109_vm3, %v98_v43  ;;  %v751_v43 = vld [vmem:[#allocation3 + $0x90] sm:$0xff] }
  0x91   :  { %463 = vmatprep.mubr.f32.mxu0 %v1353_v0  ;;  %720 = vmatprep.mubr.f32.mxu1 %v1353_v0 }
  0x94   :  { %1243 = vmatmul.mubr.msk.f32.gmra.mrb[60].mxu0 %vm109_vm3, %v99_v44  ;;  %1277 = vmatmul.mubr.msk.f32.gmra.mrb[60].mxu1 %vm109_vm3, %v99_v44 }
  0x95   :  { %469 = vmatprep.mubr.f32.mxu0 %v1353_v0  ;;  %726 = vmatprep.mubr.f32.mxu1 %v1353_v0 }
  0x98   :  { %1244 = vmatmul.mubr.msk.f32.gmra.mrb[62].mxu0 %vm109_vm3, %v100_v45  ;;  %1278 = vmatmul.mubr.msk.f32.gmra.mrb[62].mxu1 %vm109_vm3, %v100_v45  ;;  %v753_v45 = vld [vmem:[#allocation3 + $0xa0] sm:$0xff] }
  0x99   :  { %1105 = vmatprep.mubr.bf16.mxu0 %v1301_v59  ;;  %1148 = vmatprep.mubr.bf16.mxu1 %v1301_v59 }
  0xef   :  { %v285_v46 = vpop.f32.mrb[0].mxu0  ;;  %v542_v47 = vpop.f32.mrb[0].mxu1 }
  0xf0   :  { %v287_v48 = vpop.f32.mrb[1].mxu0  ;;  %v544_v51 = vpop.f32.mrb[1].mxu1  ;;  %v861_v60 = vadd.f32 %v733_v49, %v285_v46  ;;  %v863_v61 = vadd.f32 %v735_v50, %v542_v47  ;;  %v750_v46 = vld [vmem:[#allocation3 + $0x88] sm:$0xff]  ;;  %v755_v47 = vld [vmem:[#allocation3 + $0xb0] sm:$0xff]  ;;  %v752_v49 = vld [vmem:[#allocation3 + $0x98] sm:$0xff] }
  0xf1   :  { %v862_v1 = vadd.f32 %v734_v53, %v287_v48  ;;  %v864_v5 = vadd.f32 %v736_v56, %v544_v51  ;;  %v754_v48 = vld [vmem:[#allocation3 + $0xa8] sm:$0xff]  ;;  %v756_v51 = vld [vmem:[#allocation3 + $0xb8] sm:$0xff] }
  0xf3   :  { %v291_v57 = vpop.f32.mrb[2].mxu0  ;;  %v548_v63 = vpop.f32.mrb[2].mxu1 }
  0xf4   :  { %v865_v62 = vadd.f32 %v737_v52, %v291_v57  ;;  %v293_v0 = vpop.f32.mrb[3].mxu0  ;;  %v867_v2 = vadd.f32 %v739_v54, %v548_v63  ;;  %v550_v4 = vpop.f32.mrb[3].mxu1 }
  0xf5   :  { %v866_v3 = vadd.f32 %v738_v55, %v293_v0  ;;  %v868_v7 = vadd.f32 %v740_v58, %v550_v4 }
  0xf6   :  { %v989_v6 = vpack.c.bf16 %v865_v62, %v861_v60  ;;  %v991_v8 = vpack.c.bf16 %v867_v2, %v863_v61 }
  0xf7   :  { %v990_v9 = vpack.c.bf16 %v866_v3, %v862_v1  ;;  %v297_v10 = vpop.f32.mrb[4].mxu0  ;;  %v992_v11 = vpack.c.bf16 %v868_v7, %v864_v5  ;;  %v554_v12 = vpop.f32.mrb[4].mxu1  ;;  %v759_v7 = vld [vmem:[#allocation3 + $0xd0] sm:$0xff] }
  0xf8   :  { %v299_v13 = vpop.f32.mrb[5].mxu0  ;;  %v556_v16 = vpop.f32.mrb[5].mxu1  ;;  %v869_v24 = vadd.f32 %v741_v14, %v297_v10  ;;  %v871_v28 = vadd.f32 %v743_v15, %v554_v12  ;;  %v758_v10 = vld [vmem:[#allocation3 + $0xc8] sm:$0xff]  ;;  %v764_v15 = vld [vmem:[#allocation3 + $0xf8] sm:$0xff] }
  0xf9   :  { %1073 = vmatprep.subr.bf16.mxu0 %v990_v9  ;;  %1116 = vmatprep.subr.bf16.mxu1 %v992_v11  ;;  %v870_v29 = vadd.f32 %v742_v18, %v299_v13  ;;  %v872_v33 = vadd.f32 %v744_v21, %v556_v16  ;;  %v761_v9 = vld [vmem:[#allocation3 + $0xe0] sm:$0xff]  ;;  %v763_v11 = vld [vmem:[#allocation3 + $0xf0] sm:$0xff]  ;;  %v762_v12 = vld [vmem:[#allocation3 + $0xe8] sm:$0xff] }
  0xfa   :  { %1074 = vmatpush1.bf16.msra.mxu0 %v989_v6  ;;  %1117 = vmatpush1.bf16.msra.mxu1 %v991_v8  ;;  %v757_v6 = vld [vmem:[#allocation3 + $0xc0] sm:$0xff]  ;;  %v760_v13 = vld [vmem:[#allocation3 + $0xd8] sm:$0xff] }
  0xfb   :  { %v303_v22 = vpop.f32.mrb[6].mxu0  ;;  %v560_v26 = vpop.f32.mrb[6].mxu1 }
  0xfc   :  { %v873_v25 = vadd.f32 %v745_v17, %v303_v22  ;;  %v305_v27 = vpop.f32.mrb[7].mxu0  ;;  %v875_v30 = vadd.f32 %v747_v19, %v560_v26  ;;  %v562_v32 = vpop.f32.mrb[7].mxu1 }
  0xfd   :  { %v874_v31 = vadd.f32 %v746_v20, %v305_v27  ;;  %v876_v35 = vadd.f32 %v748_v23, %v562_v32 }
  0xfe   :  { %v993_v34 = vpack.c.bf16 %v873_v25, %v869_v24  ;;  %v995_v36 = vpack.c.bf16 %v875_v30, %v871_v28 }
  0xff   :  { %v994_v37 = vpack.c.bf16 %v874_v31, %v870_v29  ;;  %v309_v38 = vpop.f32.mrb[8].mxu0  ;;  %v996_v39 = vpack.c.bf16 %v876_v35, %v872_v33  ;;  %v566_v40 = vpop.f32.mrb[8].mxu1  ;;  %v767_v35 = vld [vmem:[#allocation3 + $0x110] sm:$0xff] }
 0x100   :  { %v311_v41 = vpop.f32.mrb[9].mxu0  ;;  %v568_v44 = vpop.f32.mrb[9].mxu1  ;;  %v877_v52 = vadd.f32 %v749_v42, %v309_v38  ;;  %v879_v56 = vadd.f32 %v751_v43, %v566_v40  ;;  %v766_v38 = vld [vmem:[#allocation3 + $0x108] sm:$0xff]  ;;  %v772_v43 = vld [vmem:[#allocation3 + $0x138] sm:$0xff] }
 0x101   :  { %1075 = vmatprep.subr.bf16.mxu0 %v994_v37  ;;  %1118 = vmatprep.subr.bf16.mxu1 %v996_v39  ;;  %v878_v57 = vadd.f32 %v750_v46, %v311_v41  ;;  %v880_v61 = vadd.f32 %v752_v49, %v568_v44  ;;  %v769_v37 = vld [vmem:[#allocation3 + $0x120] sm:$0xff]  ;;  %v771_v39 = vld [vmem:[#allocation3 + $0x130] sm:$0xff]  ;;  %v770_v40 = vld [vmem:[#allocation3 + $0x128] sm:$0xff] }
 0x102   :  { %1076 = vmatpush1.bf16.msra.mxu0 %v993_v34  ;;  %1119 = vmatpush1.bf16.msra.mxu1 %v995_v36  ;;  %v765_v34 = vld [vmem:[#allocation3 + $0x100] sm:$0xff]  ;;  %v768_v41 = vld [vmem:[#allocation3 + $0x118] sm:$0xff] }
 0x103   :  { %v315_v50 = vpop.f32.mrb[10].mxu0  ;;  %v572_v54 = vpop.f32.mrb[10].mxu1 }
 0x104   :  { %v881_v53 = vadd.f32 %v753_v45, %v315_v50  ;;  %v317_v55 = vpop.f32.mrb[11].mxu0  ;;  %v883_v58 = vadd.f32 %v755_v47, %v572_v54  ;;  %v574_v60 = vpop.f32.mrb[11].mxu1 }
 0x105   :  { %v882_v59 = vadd.f32 %v754_v48, %v317_v55  ;;  %v884_v63 = vadd.f32 %v756_v51, %v574_v60 }
 0x106   :  { %v997_v62 = vpack.c.bf16 %v881_v53, %v877_v52  ;;  %v999_v0 = vpack.c.bf16 %v883_v58, %v879_v56 }
 0x107   :  { %v998_v1 = vpack.c.bf16 %v882_v59, %v878_v57  ;;  %v321_v2 = vpop.f32.mrb[12].mxu0  ;;  %v1000_v3 = vpack.c.bf16 %v884_v63, %v880_v61  ;;  %v578_v4 = vpop.f32.mrb[12].mxu1  ;;  %v775_v63 = vld [vmem:[#allocation3 + $0x150] sm:$0xff] }
 0x108   :  { %v323_v5 = vpop.f32.mrb[13].mxu0  ;;  %v580_v8 = vpop.f32.mrb[13].mxu1  ;;  %v885_v16 = vadd.f32 %v757_v6, %v321_v2  ;;  %v887_v20 = vadd.f32 %v759_v7, %v578_v4  ;;  %v774_v2 = vld [vmem:[#allocation3 + $0x148] sm:$0xff]  ;;  %v780_v7 = vld [vmem:[#allocation3 + $0x178] sm:$0xff] }
 0x109   :  { %1077 = vmatprep.subr.bf16.mxu0 %v998_v1  ;;  %1120 = vmatprep.subr.bf16.mxu1 %v1000_v3  ;;  %v886_v21 = vadd.f32 %v758_v10, %v323_v5  ;;  %v888_v25 = vadd.f32 %v760_v13, %v580_v8  ;;  %v777_v1 = vld [vmem:[#allocation3 + $0x160] sm:$0xff]  ;;  %v779_v3 = vld [vmem:[#allocation3 + $0x170] sm:$0xff]  ;;  %v778_v4 = vld [vmem:[#allocation3 + $0x168] sm:$0xff] }
 0x10a   :  { %1078 = vmatpush1.bf16.msra.mxu0 %v997_v62  ;;  %1121 = vmatpush1.bf16.msra.mxu1 %v999_v0  ;;  %v773_v62 = vld [vmem:[#allocation3 + $0x140] sm:$0xff]  ;;  %v776_v5 = vld [vmem:[#allocation3 + $0x158] sm:$0xff] }
 0x10b   :  { %v327_v14 = vpop.f32.mrb[14].mxu0  ;;  %v584_v18 = vpop.f32.mrb[14].mxu1 }
 0x10c   :  { %v889_v17 = vadd.f32 %v761_v9, %v327_v14  ;;  %v329_v19 = vpop.f32.mrb[15].mxu0  ;;  %v891_v22 = vadd.f32 %v763_v11, %v584_v18  ;;  %v586_v24 = vpop.f32.mrb[15].mxu1 }
 0x10d   :  { %v890_v23 = vadd.f32 %v762_v12, %v329_v19  ;;  %v892_v27 = vadd.f32 %v764_v15, %v586_v24 }
 0x10e   :  { %v1001_v26 = vpack.c.bf16 %v889_v17, %v885_v16  ;;  %v1003_v28 = vpack.c.bf16 %v891_v22, %v887_v20 }
 0x10f   :  { %v1002_v29 = vpack.c.bf16 %v890_v23, %v886_v21  ;;  %v333_v30 = vpop.f32.mrb[16].mxu0  ;;  %v1004_v31 = vpack.c.bf16 %v892_v27, %v888_v25  ;;  %v590_v32 = vpop.f32.mrb[16].mxu1  ;;  %v783_v27 = vld [vmem:[#allocation3 + $0x190] sm:$0xff] }
 0x110   :  { %v335_v33 = vpop.f32.mrb[17].mxu0  ;;  %v592_v36 = vpop.f32.mrb[17].mxu1  ;;  %v893_v44 = vadd.f32 %v765_v34, %v333_v30  ;;  %v895_v48 = vadd.f32 %v767_v35, %v590_v32  ;;  %v782_v30 = vld [vmem:[#allocation3 + $0x188] sm:$0xff]  ;;  %v788_v35 = vld [vmem:[#allocation3 + $0x1b8] sm:$0xff] }
 0x111   :  { %1079 = vmatprep.subr.bf16.mxu0 %v1002_v29  ;;  %1122 = vmatprep.subr.bf16.mxu1 %v1004_v31  ;;  %v894_v49 = vadd.f32 %v766_v38, %v335_v33  ;;  %v896_v53 = vadd.f32 %v768_v41, %v592_v36  ;;  %v785_v29 = vld [vmem:[#allocation3 + $0x1a0] sm:$0xff]  ;;  %v787_v31 = vld [vmem:[#allocation3 + $0x1b0] sm:$0xff]  ;;  %v786_v32 = vld [vmem:[#allocation3 + $0x1a8] sm:$0xff] }
 0x112   :  { %1080 = vmatpush1.bf16.msra.mxu0 %v1001_v26  ;;  %1123 = vmatpush1.bf16.msra.mxu1 %v1003_v28  ;;  %v781_v26 = vld [vmem:[#allocation3 + $0x180] sm:$0xff]  ;;  %v784_v33 = vld [vmem:[#allocation3 + $0x198] sm:$0xff] }
 0x113   :  { %v339_v42 = vpop.f32.mrb[18].mxu0  ;;  %v596_v46 = vpop.f32.mrb[18].mxu1 }
 0x114   :  { %v897_v45 = vadd.f32 %v769_v37, %v339_v42  ;;  %v341_v47 = vpop.f32.mrb[19].mxu0  ;;  %v899_v50 = vadd.f32 %v771_v39, %v596_v46  ;;  %v598_v52 = vpop.f32.mrb[19].mxu1 }
 0x115   :  { %v898_v51 = vadd.f32 %v770_v40, %v341_v47  ;;  %v900_v55 = vadd.f32 %v772_v43, %v598_v52 }
 0x116   :  { %v1005_v54 = vpack.c.bf16 %v897_v45, %v893_v44  ;;  %v1007_v56 = vpack.c.bf16 %v899_v50, %v895_v48 }
 0x117   :  { %v1006_v57 = vpack.c.bf16 %v898_v51, %v894_v49  ;;  %v345_v58 = vpop.f32.mrb[20].mxu0  ;;  %v1008_v59 = vpack.c.bf16 %v900_v55, %v896_v53  ;;  %v602_v60 = vpop.f32.mrb[20].mxu1  ;;  %v791_v55 = vld [vmem:[#allocation3 + $0x1d0] sm:$0xff] }
 0x118   :  { %v347_v61 = vpop.f32.mrb[21].mxu0  ;;  %v604_v0 = vpop.f32.mrb[21].mxu1  ;;  %v901_v8 = vadd.f32 %v773_v62, %v345_v58  ;;  %v903_v12 = vadd.f32 %v775_v63, %v602_v60  ;;  %v790_v58 = vld [vmem:[#allocation3 + $0x1c8] sm:$0xff]  ;;  %v796_v63 = vld [vmem:[#allocation3 + $0x1f8] sm:$0xff] }
 0x119   :  { %1081 = vmatprep.subr.bf16.mxu0 %v1006_v57  ;;  %1124 = vmatprep.subr.bf16.mxu1 %v1008_v59  ;;  %v902_v13 = vadd.f32 %v774_v2, %v347_v61  ;;  %v904_v17 = vadd.f32 %v776_v5, %v604_v0  ;;  %v793_v57 = vld [vmem:[#allocation3 + $0x1e0] sm:$0xff]  ;;  %v795_v59 = vld [vmem:[#allocation3 + $0x1f0] sm:$0xff]  ;;  %v794_v60 = vld [vmem:[#allocation3 + $0x1e8] sm:$0xff] }
 0x11a   :  { %1082 = vmatpush1.bf16.msra.mxu0 %v1005_v54  ;;  %1125 = vmatpush1.bf16.msra.mxu1 %v1007_v56  ;;  %v789_v54 = vld [vmem:[#allocation3 + $0x1c0] sm:$0xff]  ;;  %v792_v61 = vld [vmem:[#allocation3 + $0x1d8] sm:$0xff] }
 0x11b   :  { %v351_v6 = vpop.f32.mrb[22].mxu0  ;;  %v608_v10 = vpop.f32.mrb[22].mxu1 }
 0x11c   :  { %v905_v9 = vadd.f32 %v777_v1, %v351_v6  ;;  %v353_v11 = vpop.f32.mrb[23].mxu0  ;;  %v907_v14 = vadd.f32 %v779_v3, %v608_v10  ;;  %v610_v16 = vpop.f32.mrb[23].mxu1 }
 0x11d   :  { %v906_v15 = vadd.f32 %v778_v4, %v353_v11  ;;  %v908_v19 = vadd.f32 %v780_v7, %v610_v16 }
 0x11e   :  { %v1009_v18 = vpack.c.bf16 %v905_v9, %v901_v8  ;;  %v1011_v20 = vpack.c.bf16 %v907_v14, %v903_v12 }
 0x11f   :  { %v1010_v21 = vpack.c.bf16 %v906_v15, %v902_v13  ;;  %v357_v22 = vpop.f32.mrb[24].mxu0  ;;  %v1012_v23 = vpack.c.bf16 %v908_v19, %v904_v17  ;;  %v614_v24 = vpop.f32.mrb[24].mxu1  ;;  %v799_v19 = vld [vmem:[#allocation3 + $0x210] sm:$0xff] }
 0x120   :  { %v359_v25 = vpop.f32.mrb[25].mxu0  ;;  %v616_v28 = vpop.f32.mrb[25].mxu1  ;;  %v909_v36 = vadd.f32 %v781_v26, %v357_v22  ;;  %v911_v40 = vadd.f32 %v783_v27, %v614_v24  ;;  %v798_v22 = vld [vmem:[#allocation3 + $0x208] sm:$0xff]  ;;  %v804_v27 = vld [vmem:[#allocation3 + $0x238] sm:$0xff] }
 0x121   :  { %1083 = vmatprep.subr.bf16.mxu0 %v1010_v21  ;;  %1126 = vmatprep.subr.bf16.mxu1 %v1012_v23  ;;  %v910_v41 = vadd.f32 %v782_v30, %v359_v25  ;;  %v912_v45 = vadd.f32 %v784_v33, %v616_v28  ;;  %v801_v21 = vld [vmem:[#allocation3 + $0x220] sm:$0xff]  ;;  %v803_v23 = vld [vmem:[#allocation3 + $0x230] sm:$0xff]  ;;  %v802_v24 = vld [vmem:[#allocation3 + $0x228] sm:$0xff] }
 0x122   :  { %1084 = vmatpush1.bf16.msra.mxu0 %v1009_v18  ;;  %1127 = vmatpush1.bf16.msra.mxu1 %v1011_v20  ;;  %v797_v18 = vld [vmem:[#allocation3 + $0x200] sm:$0xff]  ;;  %v800_v25 = vld [vmem:[#allocation3 + $0x218] sm:$0xff] }
 0x123   :  { %v363_v34 = vpop.f32.mrb[26].mxu0  ;;  %v620_v38 = vpop.f32.mrb[26].mxu1 }
 0x124   :  { %v913_v37 = vadd.f32 %v785_v29, %v363_v34  ;;  %v365_v39 = vpop.f32.mrb[27].mxu0  ;;  %v915_v42 = vadd.f32 %v787_v31, %v620_v38  ;;  %v622_v44 = vpop.f32.mrb[27].mxu1 }
 0x125   :  { %v914_v43 = vadd.f32 %v786_v32, %v365_v39  ;;  %v916_v47 = vadd.f32 %v788_v35, %v622_v44 }
 0x126   :  { %v1013_v46 = vpack.c.bf16 %v913_v37, %v909_v36  ;;  %v1015_v48 = vpack.c.bf16 %v915_v42, %v911_v40 }
 0x127   :  { %v1014_v49 = vpack.c.bf16 %v914_v43, %v910_v41  ;;  %v369_v50 = vpop.f32.mrb[28].mxu0  ;;  %v1016_v51 = vpack.c.bf16 %v916_v47, %v912_v45  ;;  %v626_v52 = vpop.f32.mrb[28].mxu1  ;;  %v807_v47 = vld [vmem:[#allocation3 + $0x250] sm:$0xff] }
 0x128   :  { %v371_v53 = vpop.f32.mrb[29].mxu0  ;;  %v628_v56 = vpop.f32.mrb[29].mxu1  ;;  %v917_v0 = vadd.f32 %v789_v54, %v369_v50  ;;  %v919_v4 = vadd.f32 %v791_v55, %v626_v52  ;;  %v806_v50 = vld [vmem:[#allocation3 + $0x248] sm:$0xff]  ;;  %v812_v55 = vld [vmem:[#allocation3 + $0x278] sm:$0xff] }
 0x129   :  { %1085 = vmatprep.subr.bf16.mxu0 %v1014_v49  ;;  %1128 = vmatprep.subr.bf16.mxu1 %v1016_v51  ;;  %v918_v5 = vadd.f32 %v790_v58, %v371_v53  ;;  %v920_v9 = vadd.f32 %v792_v61, %v628_v56  ;;  %v809_v49 = vld [vmem:[#allocation3 + $0x260] sm:$0xff]  ;;  %v811_v51 = vld [vmem:[#allocation3 + $0x270] sm:$0xff]  ;;  %v810_v52 = vld [vmem:[#allocation3 + $0x268] sm:$0xff] }
 0x12a   :  { %1086 = vmatpush1.bf16.msra.mxu0 %v1013_v46  ;;  %1129 = vmatpush1.bf16.msra.mxu1 %v1015_v48  ;;  %v805_v46 = vld [vmem:[#allocation3 + $0x240] sm:$0xff]  ;;  %v808_v53 = vld [vmem:[#allocation3 + $0x258] sm:$0xff] }
 0x12b   :  { %v375_v62 = vpop.f32.mrb[30].mxu0  ;;  %v632_v2 = vpop.f32.mrb[30].mxu1 }
 0x12c   :  { %v921_v1 = vadd.f32 %v793_v57, %v375_v62  ;;  %v377_v3 = vpop.f32.mrb[31].mxu0  ;;  %v923_v6 = vadd.f32 %v795_v59, %v632_v2  ;;  %v634_v8 = vpop.f32.mrb[31].mxu1 }
 0x12d   :  { %v922_v7 = vadd.f32 %v794_v60, %v377_v3  ;;  %v924_v11 = vadd.f32 %v796_v63, %v634_v8 }
 0x12e   :  { %v1017_v10 = vpack.c.bf16 %v921_v1, %v917_v0  ;;  %v1019_v12 = vpack.c.bf16 %v923_v6, %v919_v4 }
 0x12f   :  { %v1018_v13 = vpack.c.bf16 %v922_v7, %v918_v5  ;;  %v381_v14 = vpop.f32.mrb[32].mxu0  ;;  %v1020_v15 = vpack.c.bf16 %v924_v11, %v920_v9  ;;  %v638_v16 = vpop.f32.mrb[32].mxu1  ;;  %v815_v11 = vld [vmem:[#allocation3 + $0x290] sm:$0xff] }
 0x130   :  { %v383_v17 = vpop.f32.mrb[33].mxu0  ;;  %v640_v20 = vpop.f32.mrb[33].mxu1  ;;  %v925_v28 = vadd.f32 %v797_v18, %v381_v14  ;;  %v927_v32 = vadd.f32 %v799_v19, %v638_v16  ;;  %v814_v14 = vld [vmem:[#allocation3 + $0x288] sm:$0xff]  ;;  %v820_v19 = vld [vmem:[#allocation3 + $0x2b8] sm:$0xff] }
 0x131   :  { %1087 = vmatprep.subr.bf16.mxu0 %v1018_v13  ;;  %1130 = vmatprep.subr.bf16.mxu1 %v1020_v15  ;;  %v926_v33 = vadd.f32 %v798_v22, %v383_v17  ;;  %v928_v37 = vadd.f32 %v800_v25, %v640_v20  ;;  %v817_v13 = vld [vmem:[#allocation3 + $0x2a0] sm:$0xff]  ;;  %v819_v15 = vld [vmem:[#allocation3 + $0x2b0] sm:$0xff]  ;;  %v818_v16 = vld [vmem:[#allocation3 + $0x2a8] sm:$0xff] }
 0x132   :  { %1088 = vmatpush1.bf16.msra.mxu0 %v1017_v10  ;;  %1131 = vmatpush1.bf16.msra.mxu1 %v1019_v12  ;;  %v813_v10 = vld [vmem:[#allocation3 + $0x280] sm:$0xff]  ;;  %v816_v17 = vld [vmem:[#allocation3 + $0x298] sm:$0xff] }
 0x133   :  { %v387_v26 = vpop.f32.mrb[34].mxu0  ;;  %v644_v30 = vpop.f32.mrb[34].mxu1 }
 0x134   :  { %v929_v29 = vadd.f32 %v801_v21, %v387_v26  ;;  %v389_v31 = vpop.f32.mrb[35].mxu0  ;;  %v931_v34 = vadd.f32 %v803_v23, %v644_v30  ;;  %v646_v36 = vpop.f32.mrb[35].mxu1 }
 0x135   :  { %v930_v35 = vadd.f32 %v802_v24, %v389_v31  ;;  %v932_v39 = vadd.f32 %v804_v27, %v646_v36 }
 0x136   :  { %v1021_v38 = vpack.c.bf16 %v929_v29, %v925_v28  ;;  %v1023_v40 = vpack.c.bf16 %v931_v34, %v927_v32 }
 0x137   :  { %v1022_v41 = vpack.c.bf16 %v930_v35, %v926_v33  ;;  %v393_v42 = vpop.f32.mrb[36].mxu0  ;;  %v1024_v43 = vpack.c.bf16 %v932_v39, %v928_v37  ;;  %v650_v44 = vpop.f32.mrb[36].mxu1  ;;  %v823_v39 = vld [vmem:[#allocation3 + $0x2d0] sm:$0xff] }
 0x138   :  { %v395_v45 = vpop.f32.mrb[37].mxu0  ;;  %v652_v48 = vpop.f32.mrb[37].mxu1  ;;  %v933_v56 = vadd.f32 %v805_v46, %v393_v42  ;;  %v935_v60 = vadd.f32 %v807_v47, %v650_v44  ;;  %v822_v42 = vld [vmem:[#allocation3 + $0x2c8] sm:$0xff]  ;;  %v828_v47 = vld [vmem:[#allocation3 + $0x2f8] sm:$0xff] }
 0x139   :  { %1089 = vmatprep.subr.bf16.mxu0 %v1022_v41  ;;  %1132 = vmatprep.subr.bf16.mxu1 %v1024_v43  ;;  %v934_v61 = vadd.f32 %v806_v50, %v395_v45  ;;  %v936_v1 = vadd.f32 %v808_v53, %v652_v48  ;;  %v825_v41 = vld [vmem:[#allocation3 + $0x2e0] sm:$0xff]  ;;  %v827_v43 = vld [vmem:[#allocation3 + $0x2f0] sm:$0xff]  ;;  %v826_v44 = vld [vmem:[#allocation3 + $0x2e8] sm:$0xff] }
 0x13a   :  { %1090 = vmatpush1.bf16.msra.mxu0 %v1021_v38  ;;  %1133 = vmatpush1.bf16.msra.mxu1 %v1023_v40  ;;  %v821_v38 = vld [vmem:[#allocation3 + $0x2c0] sm:$0xff]  ;;  %v824_v45 = vld [vmem:[#allocation3 + $0x2d8] sm:$0xff] }
 0x13b   :  { %v399_v54 = vpop.f32.mrb[38].mxu0  ;;  %v656_v58 = vpop.f32.mrb[38].mxu1 }
 0x13c   :  { %v937_v57 = vadd.f32 %v809_v49, %v399_v54  ;;  %v401_v59 = vpop.f32.mrb[39].mxu0  ;;  %v939_v62 = vadd.f32 %v811_v51, %v656_v58  ;;  %v658_v0 = vpop.f32.mrb[39].mxu1 }
 0x13d   :  { %v938_v63 = vadd.f32 %v810_v52, %v401_v59  ;;  %v940_v3 = vadd.f32 %v812_v55, %v658_v0 }
 0x13e   :  { %v1025_v2 = vpack.c.bf16 %v937_v57, %v933_v56  ;;  %v1027_v4 = vpack.c.bf16 %v939_v62, %v935_v60 }
 0x13f   :  { %v1026_v5 = vpack.c.bf16 %v938_v63, %v934_v61  ;;  %v405_v6 = vpop.f32.mrb[40].mxu0  ;;  %v1028_v7 = vpack.c.bf16 %v940_v3, %v936_v1  ;;  %v662_v8 = vpop.f32.mrb[40].mxu1  ;;  %v831_v3 = vld [vmem:[#allocation3 + $0x310] sm:$0xff] }
 0x140   :  { %v407_v9 = vpop.f32.mrb[41].mxu0  ;;  %v664_v12 = vpop.f32.mrb[41].mxu1  ;;  %v941_v20 = vadd.f32 %v813_v10, %v405_v6  ;;  %v943_v24 = vadd.f32 %v815_v11, %v662_v8  ;;  %v830_v6 = vld [vmem:[#allocation3 + $0x308] sm:$0xff]  ;;  %v836_v11 = vld [vmem:[#allocation3 + $0x338] sm:$0xff] }
 0x141   :  { %1091 = vmatprep.subr.bf16.mxu0 %v1026_v5  ;;  %1134 = vmatprep.subr.bf16.mxu1 %v1028_v7  ;;  %v942_v25 = vadd.f32 %v814_v14, %v407_v9  ;;  %v944_v29 = vadd.f32 %v816_v17, %v664_v12  ;;  %v833_v5 = vld [vmem:[#allocation3 + $0x320] sm:$0xff]  ;;  %v835_v7 = vld [vmem:[#allocation3 + $0x330] sm:$0xff]  ;;  %v834_v8 = vld [vmem:[#allocation3 + $0x328] sm:$0xff] }
 0x142   :  { %1092 = vmatpush1.bf16.msra.mxu0 %v1025_v2  ;;  %1135 = vmatpush1.bf16.msra.mxu1 %v1027_v4  ;;  %v829_v2 = vld [vmem:[#allocation3 + $0x300] sm:$0xff]  ;;  %v832_v9 = vld [vmem:[#allocation3 + $0x318] sm:$0xff] }
 0x143   :  { %v411_v18 = vpop.f32.mrb[42].mxu0  ;;  %v668_v22 = vpop.f32.mrb[42].mxu1 }
 0x144   :  { %v945_v21 = vadd.f32 %v817_v13, %v411_v18  ;;  %v413_v23 = vpop.f32.mrb[43].mxu0  ;;  %v947_v26 = vadd.f32 %v819_v15, %v668_v22  ;;  %v670_v28 = vpop.f32.mrb[43].mxu1 }
 0x145   :  { %v946_v27 = vadd.f32 %v818_v16, %v413_v23  ;;  %v948_v31 = vadd.f32 %v820_v19, %v670_v28 }
 0x146   :  { %v1029_v30 = vpack.c.bf16 %v945_v21, %v941_v20  ;;  %v1031_v32 = vpack.c.bf16 %v947_v26, %v943_v24 }
 0x147   :  { %v1030_v33 = vpack.c.bf16 %v946_v27, %v942_v25  ;;  %v417_v34 = vpop.f32.mrb[44].mxu0  ;;  %v1032_v35 = vpack.c.bf16 %v948_v31, %v944_v29  ;;  %v674_v36 = vpop.f32.mrb[44].mxu1  ;;  %v839_v31 = vld [vmem:[#allocation3 + $0x350] sm:$0xff] }
 0x148   :  { %v419_v37 = vpop.f32.mrb[45].mxu0  ;;  %v676_v40 = vpop.f32.mrb[45].mxu1  ;;  %v949_v48 = vadd.f32 %v821_v38, %v417_v34  ;;  %v951_v52 = vadd.f32 %v823_v39, %v674_v36  ;;  %v838_v34 = vld [vmem:[#allocation3 + $0x348] sm:$0xff]  ;;  %v844_v39 = vld [vmem:[#allocation3 + $0x378] sm:$0xff] }
 0x149   :  { %1093 = vmatprep.subr.bf16.mxu0 %v1030_v33  ;;  %1136 = vmatprep.subr.bf16.mxu1 %v1032_v35  ;;  %v950_v53 = vadd.f32 %v822_v42, %v419_v37  ;;  %v952_v57 = vadd.f32 %v824_v45, %v676_v40  ;;  %v841_v33 = vld [vmem:[#allocation3 + $0x360] sm:$0xff]  ;;  %v843_v35 = vld [vmem:[#allocation3 + $0x370] sm:$0xff]  ;;  %v842_v36 = vld [vmem:[#allocation3 + $0x368] sm:$0xff] }
 0x14a   :  { %1094 = vmatpush1.bf16.msra.mxu0 %v1029_v30  ;;  %1137 = vmatpush1.bf16.msra.mxu1 %v1031_v32  ;;  %v837_v30 = vld [vmem:[#allocation3 + $0x340] sm:$0xff]  ;;  %v840_v37 = vld [vmem:[#allocation3 + $0x358] sm:$0xff] }
 0x14b   :  { %v423_v46 = vpop.f32.mrb[46].mxu0  ;;  %v680_v50 = vpop.f32.mrb[46].mxu1 }
 0x14c   :  { %v953_v49 = vadd.f32 %v825_v41, %v423_v46  ;;  %v425_v51 = vpop.f32.mrb[47].mxu0  ;;  %v955_v54 = vadd.f32 %v827_v43, %v680_v50  ;;  %v682_v56 = vpop.f32.mrb[47].mxu1 }
 0x14d   :  { %v954_v55 = vadd.f32 %v826_v44, %v425_v51  ;;  %v956_v59 = vadd.f32 %v828_v47, %v682_v56 }
 0x14e   :  { %v1033_v58 = vpack.c.bf16 %v953_v49, %v949_v48  ;;  %v1035_v60 = vpack.c.bf16 %v955_v54, %v951_v52 }
 0x14f   :  { %v1034_v61 = vpack.c.bf16 %v954_v55, %v950_v53  ;;  %v429_v62 = vpop.f32.mrb[48].mxu0  ;;  %v1036_v63 = vpack.c.bf16 %v956_v59, %v952_v57  ;;  %v686_v0 = vpop.f32.mrb[48].mxu1  ;;  %v847_v59 = vld [vmem:[#allocation3 + $0x390] sm:$0xff] }
 0x150   :  { %v431_v1 = vpop.f32.mrb[49].mxu0  ;;  %v688_v4 = vpop.f32.mrb[49].mxu1  ;;  %v957_v12 = vadd.f32 %v829_v2, %v429_v62  ;;  %v959_v16 = vadd.f32 %v831_v3, %v686_v0  ;;  %v846_v62 = vld [vmem:[#allocation3 + $0x388] sm:$0xff]  ;;  %v852_v3 = vld [vmem:[#allocation3 + $0x3b8] sm:$0xff] }
 0x151   :  { %1095 = vmatprep.subr.bf16.mxu0 %v1034_v61  ;;  %1138 = vmatprep.subr.bf16.mxu1 %v1036_v63  ;;  %v958_v17 = vadd.f32 %v830_v6, %v431_v1  ;;  %v960_v21 = vadd.f32 %v832_v9, %v688_v4  ;;  %v849_v61 = vld [vmem:[#allocation3 + $0x3a0] sm:$0xff]  ;;  %v851_v63 = vld [vmem:[#allocation3 + $0x3b0] sm:$0xff]  ;;  %v850_v0 = vld [vmem:[#allocation3 + $0x3a8] sm:$0xff] }
 0x152   :  { %1096 = vmatpush1.bf16.msra.mxu0 %v1033_v58  ;;  %1139 = vmatpush1.bf16.msra.mxu1 %v1035_v60  ;;  %v845_v58 = vld [vmem:[#allocation3 + $0x380] sm:$0xff]  ;;  %v848_v1 = vld [vmem:[#allocation3 + $0x398] sm:$0xff] }
 0x153   :  { %v435_v10 = vpop.f32.mrb[50].mxu0  ;;  %v692_v14 = vpop.f32.mrb[50].mxu1 }
 0x154   :  { %v961_v13 = vadd.f32 %v833_v5, %v435_v10  ;;  %v437_v15 = vpop.f32.mrb[51].mxu0  ;;  %v963_v18 = vadd.f32 %v835_v7, %v692_v14  ;;  %v694_v20 = vpop.f32.mrb[51].mxu1 }
 0x155   :  { %v962_v19 = vadd.f32 %v834_v8, %v437_v15  ;;  %v964_v23 = vadd.f32 %v836_v11, %v694_v20 }
 0x156   :  { %v1037_v22 = vpack.c.bf16 %v961_v13, %v957_v12  ;;  %v1039_v24 = vpack.c.bf16 %v963_v18, %v959_v16 }
 0x157   :  { %v1038_v25 = vpack.c.bf16 %v962_v19, %v958_v17  ;;  %v441_v26 = vpop.f32.mrb[52].mxu0  ;;  %v1040_v27 = vpack.c.bf16 %v964_v23, %v960_v21  ;;  %v698_v28 = vpop.f32.mrb[52].mxu1  ;;  %v855_v23 = vld [vmem:[#allocation3 + $0x3d0] sm:$0xff] }
 0x158   :  { %v443_v29 = vpop.f32.mrb[53].mxu0  ;;  %v700_v32 = vpop.f32.mrb[53].mxu1  ;;  %v965_v40 = vadd.f32 %v837_v30, %v441_v26  ;;  %v967_v44 = vadd.f32 %v839_v31, %v698_v28  ;;  %v854_v26 = vld [vmem:[#allocation3 + $0x3c8] sm:$0xff]  ;;  %v860_v31 = vld [vmem:[#allocation3 + $0x3f8] sm:$0xff] }
 0x159   :  { %1097 = vmatprep.subr.bf16.mxu0 %v1038_v25  ;;  %1140 = vmatprep.subr.bf16.mxu1 %v1040_v27  ;;  %v966_v45 = vadd.f32 %v838_v34, %v443_v29  ;;  %v968_v49 = vadd.f32 %v840_v37, %v700_v32  ;;  %v857_v25 = vld [vmem:[#allocation3 + $0x3e0] sm:$0xff]  ;;  %v859_v27 = vld [vmem:[#allocation3 + $0x3f0] sm:$0xff]  ;;  %v858_v28 = vld [vmem:[#allocation3 + $0x3e8] sm:$0xff] }
 0x15a   :  { %1098 = vmatpush1.bf16.msra.mxu0 %v1037_v22  ;;  %1141 = vmatpush1.bf16.msra.mxu1 %v1039_v24  ;;  %v853_v22 = vld [vmem:[#allocation3 + $0x3c0] sm:$0xff]  ;;  %v856_v29 = vld [vmem:[#allocation3 + $0x3d8] sm:$0xff] }
 0x15b   :  { %v447_v38 = vpop.f32.mrb[54].mxu0  ;;  %v704_v42 = vpop.f32.mrb[54].mxu1 }
 0x15c   :  { %v969_v41 = vadd.f32 %v841_v33, %v447_v38  ;;  %v449_v43 = vpop.f32.mrb[55].mxu0  ;;  %v971_v46 = vadd.f32 %v843_v35, %v704_v42  ;;  %v706_v48 = vpop.f32.mrb[55].mxu1 }
 0x15d   :  { %v970_v47 = vadd.f32 %v842_v36, %v449_v43  ;;  %v972_v51 = vadd.f32 %v844_v39, %v706_v48  ;;  %v41_v48 = vlaneseq }
 0x15e   :  { %v1041_v50 = vpack.c.bf16 %v969_v41, %v965_v40  ;;  %v1043_v52 = vpack.c.bf16 %v971_v46, %v967_v44 }
 0x15f   :  { %v1042_v53 = vpack.c.bf16 %v970_v47, %v966_v45  ;;  %v453_v54 = vpop.f32.mrb[56].mxu0  ;;  %v1044_v55 = vpack.c.bf16 %v972_v51, %v968_v49  ;;  %v710_v56 = vpop.f32.mrb[56].mxu1  ;;  %v1299_v47 = vld [vmem:[%s1685_s0] ss:$8 sps:$4 sm:$0xff]   ;;  %v42_v49 = vshrl.u32 %v41_v48, 7  ;;  %s1355_s0 = smov [#allocation6]  }
 0x160   :  { %v455_v57 = vpop.f32.mrb[57].mxu0  ;;  %v712_v60 = vpop.f32.mrb[57].mxu1  ;;  %v973_v4 = vadd.f32 %v845_v58, %v453_v54  ;;  %v975_v8 = vadd.f32 %v847_v59, %v710_v56  ;;  %v39_v51 = vld [vmem:[%s1689_s4] sm:$0xf]  ;;  %s1199_s16 = sshll.u32 %s1355_s0, 4  ;;  %s1200_s16 = int_to_ptr.vmem [resolvable:$true] %s1199_s16 }
 0x161   :  { %1099 = vmatprep.subr.bf16.mxu0 %v1042_v53  ;;  %1142 = vmatprep.subr.bf16.mxu1 %v1044_v55  ;;  %v974_v9 = vadd.f32 %v846_v62, %v455_v57  ;;  %v976_v13 = vadd.f32 %v848_v1, %v712_v60  ;;  %v47_v53 = vsub.s32 1, %v42_v49  ;;  %v55_v54 = vsub.s32 3, %v42_v49  ;;  %s1324_s4 = scalar_lea.vmem %s1200_s16, 1024  ;;  %p1329_p9 = scmp.lt.s32.totalorder %s1200_s16, %s1200_s16 }
 0x162   :  { %1100 = vmatpush1.bf16.msra.mxu0 %v1041_v50  ;;  %1143 = vmatpush1.bf16.msra.mxu1 %v1043_v52  ;;  %v43_v50 = vsub.s32 0, %v42_v49  ;;  %v51_v52 = vsub.s32 2, %v42_v49  ;;  %p1325_p8 = scmp.ne.s32.totalorder %s1200_s16, %s1324_s4  ;;  %p1330_p10 = scmp.lt.s32.totalorder %s1324_s4, %s1324_s4 }
 0x163   :  { %v459_v2 = vpop.f32.mrb[58].mxu0  ;;  %v716_v6 = vpop.f32.mrb[58].mxu1  ;;  %v48_v57 = vrot.slane %v39_v51, %v47_v53  ;;  %v56_v58 = vrot.slane %v39_v51, %v55_v54 }
 0x164   :  { %v977_v5 = vadd.f32 %v849_v61, %v459_v2  ;;  %v461_v7 = vpop.f32.mrb[59].mxu0  ;;  %v979_v10 = vadd.f32 %v851_v63, %v716_v6  ;;  %v718_v12 = vpop.f32.mrb[59].mxu1  ;;  %v44_v55 = vrot.slane %v39_v51, %v43_v50  ;;  %v52_v56 = vrot.slane %v39_v51, %v51_v52  ;;  %p1331_p11 = por %p1330_p10, %p1329_p9 }
 0x165   :  { %v978_v11 = vadd.f32 %v850_v0, %v461_v7  ;;  %v980_v15 = vadd.f32 %v852_v3, %v718_v12 }
 0x166   :  { %v1045_v14 = vpack.c.bf16 %v977_v5, %v973_v4  ;;  %v1047_v16 = vpack.c.bf16 %v979_v10, %v975_v8  ;;  %p1332_p12 = pnand %p1331_p11, %p1325_p8 }
 0x167   :  { %v1046_v17 = vpack.c.bf16 %v978_v11, %v974_v9  ;;  %v465_v18 = vpop.f32.mrb[60].mxu0  ;;  %v1048_v19 = vpack.c.bf16 %v980_v15, %v976_v13  ;;  %v722_v20 = vpop.f32.mrb[60].mxu1 }
 0x168   :  { %v467_v21 = vpop.f32.mrb[61].mxu0  ;;  %v724_v24 = vpop.f32.mrb[61].mxu1  ;;  %v981_v32 = vadd.f32 %v853_v22, %v465_v18  ;;  %v983_v36 = vadd.f32 %v855_v23, %v722_v20 }
 0x169   :  { %1101 = vmatprep.subr.bf16.mxu0 %v1046_v17  ;;  %1144 = vmatprep.subr.bf16.mxu1 %v1048_v19  ;;  %v982_v37 = vadd.f32 %v854_v26, %v467_v21  ;;  %v984_v41 = vadd.f32 %v856_v29, %v724_v24 }
 0x16a   :  { %1102 = vmatpush1.bf16.msra.mxu0 %v1045_v14  ;;  %1145 = vmatpush1.bf16.msra.mxu1 %v1047_v16 }
 0x16b   :  { %v471_v30 = vpop.f32.mrb[62].mxu0  ;;  %v728_v34 = vpop.f32.mrb[62].mxu1 }
 0x16c   :  { %v985_v33 = vadd.f32 %v857_v25, %v471_v30  ;;  %v473_v35 = vpop.f32.mrb[63].mxu0  ;;  %v987_v38 = vadd.f32 %v859_v27, %v728_v34  ;;  %v730_v40 = vpop.f32.mrb[63].mxu1 }
 0x16d   :  { %v986_v39 = vadd.f32 %v858_v28, %v473_v35  ;;  %v988_v43 = vadd.f32 %v860_v31, %v730_v40 }
 0x16e   :  { %v1049_v42 = vpack.c.bf16 %v985_v33, %v981_v32  ;;  %v1051_v44 = vpack.c.bf16 %v987_v38, %v983_v36 }
 0x16f   :  { %v1050_v45 = vpack.c.bf16 %v986_v39, %v982_v37  ;;  %v1052_v46 = vpack.c.bf16 %v988_v43, %v984_v41 }
 0x171   :  { %1103 = vmatprep.subr.bf16.mxu0 %v1050_v45  ;;  %1146 = vmatprep.subr.bf16.mxu1 %v1052_v46 }
 0x172   :  { %1104 = vmatpush1.bf16.msra.mxu0 %v1049_v42  ;;  %1147 = vmatpush1.bf16.msra.mxu1 %v1051_v44 }
 0x175   :  { %1106 = vmatmul.mubr.bf16.vlgmr.msra.gmra.mrb[64].mxu0 %v1299_v47  ;;  %1149 = vmatmul.mubr.bf16.vlgmr.msra.gmra.mrb[64].mxu1 %v1299_v47 }
 0x248   :  { %v1107_v59 = vpop.f32.mrb[64].mxu0  ;;  %v1150_v61 = vpop.f32.mrb[64].mxu1 }
 0x249   :  { %v1159_v60 = vadd.f32 %v1107_v59, %v44_v55  ;;  %v1109_v62 = vpop.f32.mrb[65].mxu0  ;;  %v1161_v63 = vadd.f32 %v1150_v61, %v52_v56  ;;  %v1152_v1 = vpop.f32.mrb[65].mxu1 }
 0x24a   :  { %v1160_v0 = vadd.f32 %v1109_v62, %v48_v57  ;;  %v1111_v2 = vpop.f32.mrb[66].mxu0  ;;  %v1162_v3 = vadd.f32 %v1152_v1, %v56_v58  ;;  %v1154_v5 = vpop.f32.mrb[66].mxu1 }
 0x24b   :  { %1186 = vst [vmem:[#allocation6] sm:$0xff] %v1159_v60  ;;  %v1163_v4 = vadd.f32 %v1111_v2, %v44_v55  ;;  %v1113_v6 = vpop.f32.mrb[67].mxu0  ;;  %1188 = vst [vmem:[#allocation6 + $0x10] sm:$0xff] %v1161_v63  ;;  %v1165_v7 = vadd.f32 %v1154_v5, %v52_v56  ;;  %v1156_v9 = vpop.f32.mrb[67].mxu1 }
 0x24c   :  { %1187 = vst [vmem:[#allocation6 + $0x8] sm:$0xff] %v1160_v0  ;;  %v1164_v8 = vadd.f32 %v1113_v6, %v48_v57  ;;  %1189 = vst [vmem:[#allocation6 + $0x18] sm:$0xff] %v1162_v3  ;;  %v1166_v10 = vadd.f32 %v1156_v9, %v56_v58 }
 0x24d   :  { %1190 = vst [vmem:[#allocation6 + $0x20] sm:$0xff] %v1163_v4  ;;  %1192 = vst [vmem:[#allocation6 + $0x30] sm:$0xff] %v1165_v7 }
 0x24e   :  { %1191 = vst [vmem:[#allocation6 + $0x28] sm:$0xff] %v1164_v8  ;;  %1193 = vst [vmem:[#allocation6 + $0x38] sm:$0xff] %v1166_v10 }
 0x24f   :  { %1335 = shalt.err (!%p1332_p12)
}
 0x250   :  { %s1336_s19 = scalar_lea.hbm %s1690_s5, 1024 }
 0x251   :  { %p1337_p13 = scmp.ne.s32.totalorder %s1690_s5, %s1336_s19  ;;  %p1340_p0 = scmp.lt.u32.totalorder %s1336_s19, %s1690_s5 }
 0x253   :  { %p1342_p1 = pnand %p1340_p0, %p1337_p13 }
 0x255   :  { %1345 = shalt.err (!%p1342_p1)
}
 0x256   :  { %1205 = dma.vmem_to_hbm [thread:$0]  %s1200_s16, 1024, %s1690_s5, [#allocation5], %s1351_s28, %s1351_s28, %s1352_s29  }
 0x257   :  { %1348 = dma.done.wait [#allocation5], 1024  }
 0x258   :  { %1349 = vsyncadd [#allocation5], 4294966272 }
 0x259   :  { %1209 = vsyncpa [#allocation4], 1 }
 0x25a   :  { %1210 = vsyncpa [#allocation5], 1 }

</bundles_post_ra>
